<compile_context>
chip_gen: v7x
topology: tpu7x:2x2x1
jax: 0.10.0
libtpu: 0.0.40
codegen_flags: <defaults>
</compile_context>

<pallas_src>
import functools

import numpy as np
import jax
import jax.numpy as jnp
from jax.experimental import pallas as pl
from jax.experimental.pallas import tpu as pltpu


def _mlp_gibbs_kernel(x_ref, u_ref, cum_ref, w1_ref, b1_ref, w2_ref, b2_ref,
                      w3_ref, b3_ref, x_out_ref, delta_ref, tl_ref,
                      *, num_steps):
    """One grid step processes a (block_n, D) tile of independent chains."""
    Nb, D = x_ref.shape
    T = num_steps

    # delta block is filled one column per step below; init once.
    delta_ref[...] = jnp.zeros_like(delta_ref)

    def body(i, carry):
        x, tl = carry                                    # x: (Nb, D) f32 bits

        # pos_pred MLP: bf16 operands on the MXU, f32 accumulation, f32 bias+ReLU.
        xb = x.astype(jnp.bfloat16)                      # 0/1 -> exact in bf16
        h1 = jnp.maximum(
            jnp.dot(xb, w1_ref[...], preferred_element_type=jnp.float32)
            + b1_ref[...], 0.0).astype(jnp.bfloat16)
        h2 = jnp.maximum(
            jnp.dot(h1, w2_ref[...], preferred_element_type=jnp.float32)
            + b2_ref[...], 0.0).astype(jnp.bfloat16)
        logits = jnp.dot(h2, w3_ref[...],
                         preferred_element_type=jnp.float32) + b3_ref[...]

        # Softmax stats (f32). probs are never materialized.
        m = jnp.max(logits, axis=-1, keepdims=True)
        z = logits - m
        e = jnp.exp(z)
        s = jnp.sum(e, axis=-1, keepdims=True)           # (Nb, 1)

        # u_i = u[:, i] gathered with a tiny one-hot matmul (no (Nb, T) mask
        # work on the VPU and no (Nb, T) loop carry).
        t_iota = jax.lax.broadcasted_iota(jnp.int32, (T, 1), 0)
        sel = (t_iota == i).astype(jnp.float32)          # (T, 1)
        u_i = jnp.dot(u_ref[...], sel,
                      preferred_element_type=jnp.float32)  # (Nb, 1), exact

        # torch.multinomial(probs, 1): inverse-CDF on the unnormalized
        # cumulative (e @ upper_tri) against the scaled threshold u_i * s.
        cdf = jnp.dot(e.astype(jnp.bfloat16), cum_ref[...],
                      preferred_element_type=jnp.float32)  # (Nb, D)
        thr = u_i * s
        pos = jnp.sum((cdf < thr).astype(jnp.int32), axis=-1, keepdims=True)
        pos = jnp.minimum(pos, D - 1)                    # guard fp round-off

        lane = jax.lax.broadcasted_iota(jnp.int32, (Nb, D), 1)
        onehot = lane == pos                             # (Nb, D) bool
        z_sel = jnp.sum(jnp.where(onehot, z, 0.0), axis=-1, keepdims=True)
        tl = tl + z_sel - jnp.log(s)                     # log_softmax gather
        x = jnp.abs(x - onehot.astype(jnp.float32))      # flip chosen bit (XOR)

        # Record pos into column i of the delta output block (no (Nb,T) carry).
        step_lane = jax.lax.broadcasted_iota(jnp.int32, (Nb, T), 1)
        delta_ref[...] = jnp.where(step_lane == i,
                                   jnp.broadcast_to(pos, (Nb, T)),
                                   delta_ref[...])
        return x, tl

    x0 = x_ref[...].astype(jnp.float32)
    tl0 = jnp.zeros((Nb, 1), jnp.float32)
    x_f, tl_f = jax.lax.fori_loop(0, num_steps, body, (x0, tl0))

    x_out_ref[...] = x_f.astype(x_out_ref.dtype)
    tl_ref[...] = tl_f


def _default_block_n(n):
    """Prefer >= 2 row tiles (v7x has 2 TensorCores), tiles a multiple of 8,
    capped at 512 rows; fall back to the full batch."""
    cap = min(512, n // 2)
    cap -= cap % 8
    while cap >= 8:
        if n % cap == 0:
            return cap
        cap -= 8
    return n


def mlp_gibbs_sampler(num_steps, init_samples, params, *, key, block_n=None):
    """Forward pass of MLPGibbsSampler (mode != 'forward', target_pos=None).

    Returns ((samples, delta, total_log, very_init_samples), u) where `delta`
    is the per-step flip positions stacked into an (N, num_steps) int32 array
    and `u` are the uniforms that drove the multinomial draws.
    """
    w1, b1, w2, b2, w3, b3 = params
    x0 = init_samples.astype(jnp.int32)
    N, D = x0.shape
    H = w1.shape[1]
    assert w1.shape == (D, H) and w2.shape == (H, H) and w3.shape == (H, D)

    # Pad hidden to a multiple of 128 lanes (zero pad => mathematically exact).
    H_pad = ((H + 127) // 128) * 128

    def _pad2(a, rows, cols):
        out = jnp.zeros((rows, cols), jnp.float32)
        return out.at[:a.shape[0], :a.shape[1]].set(a.astype(jnp.float32))

    w1p = _pad2(w1, D, H_pad).astype(jnp.bfloat16)
    b1p = _pad2(jnp.reshape(b1, (1, H)), 1, H_pad)                 # f32
    w2p = _pad2(w2, H_pad, H_pad).astype(jnp.bfloat16)
    b2p = _pad2(jnp.reshape(b2, (1, H)), 1, H_pad)                 # f32
    w3p = _pad2(w3, H_pad, D).astype(jnp.bfloat16)
    b3p = jnp.reshape(b3, (1, D)).astype(jnp.float32)

    # Upper-triangular ones matrix (inclusive cumsum as a matmul); 0/1 is
    # exact in bf16.  Built once here, resident in VMEM in the kernel.
    cum = (jnp.arange(D)[:, None] <= jnp.arange(D)[None, :]).astype(jnp.bfloat16)

    if block_n is None:
        block_n = _default_block_n(N)
    assert N % block_n == 0
    assert block_n == N or block_n % 8 == 0

    # One uniform per (sample, step) drives the multinomial via inverse-CDF.
    u = jax.random.uniform(key, (N, num_steps), dtype=jnp.float32)

    kernel = functools.partial(_mlp_gibbs_kernel, num_steps=num_steps)

    def row_spec(shape):
        return pl.BlockSpec(shape, lambda n: (n, 0))

    def full_spec(shape):
        return pl.BlockSpec(shape, lambda n: (0, 0))

    # Advisory cost + explicit VMEM budget (kept <= 48 MiB so it also fits
    # v7x's 64 MiB physical VMEM).
    mm = D * H_pad + H_pad * H_pad + H_pad * D + D * D
    flops = 2 * N * num_steps * (mm + num_steps + 8 * D)
    transc = N * num_steps * (D + 1)
    bytes_acc = (2 * N * D * 4 + 2 * N * num_steps * 4 + N * 4
                 + 2 * mm + 4 * (2 * H_pad + D))
    tile_bytes = block_n * (2 * D * 4 + 2 * num_steps * 4 + 4)
    resident_bytes = 2 * mm + 4 * (2 * H_pad + D)
    vmem_limit = int(min(48 << 20, max(32 << 20,
                                       4 * (2 * tile_bytes + resident_bytes))))

    x_out, delta, total_log = pl.pallas_call(
        kernel,
        out_shape=(
            jax.ShapeDtypeStruct((N, D), jnp.int32),
            jax.ShapeDtypeStruct((N, num_steps), jnp.int32),
            jax.ShapeDtypeStruct((N, 1), jnp.float32),
        ),
        grid=(N // block_n,),
        in_specs=[
            row_spec((block_n, D)),               # x
            row_spec((block_n, num_steps)),       # u
            full_spec((D, D)),                    # cumsum matrix (resident)
            full_spec((D, H_pad)),                # w1 (resident, bf16)
            full_spec((1, H_pad)),                # b1 (f32)
            full_spec((H_pad, H_pad)),            # w2
            full_spec((1, H_pad)),                # b2
            full_spec((H_pad, D)),                # w3
            full_spec((1, D)),                    # b3
        ],
        out_specs=(
            row_spec((block_n, D)),
            row_spec((block_n, num_steps)),
            row_spec((block_n, 1)),
        ),
        compiler_params=pltpu.CompilerParams(
            dimension_semantics=("parallel",),
            vmem_limit_bytes=vmem_limit),
        cost_estimate=pl.CostEstimate(
            flops=int(flops), transcendentals=int(transc),
            bytes_accessed=int(bytes_acc)),
    )(x0, u, cum, w1p, b1p, w2p, b2p, w3p, b3p)

    # TODO(synk): mode == 'forward' adds sum(base_sampler(input_samples=x0)) to
    # total_log and the target_pos-given path skips sampling; base_sampler is
    # an arbitrary external module, so those paths stay host-side.
    very_init_samples = x0
    return (x_out, delta, total_log, very_init_samples), u


def _trajectory_check(x0, u, delta, params, num_steps):
    """Pure-JAX consistency check that follows the kernel's sampled positions.

    Emulates the kernel's numerics (bf16 matmul operands, f32 accumulation,
    unnormalized inverse-CDF) and verifies (a) each sampled position lies on
    the correct CDF bracket for its uniform, (b) the final bit pattern, and
    (c) the accumulated log-probability.
    """
    w1, b1, w2, b2, w3, b3 = params
    q = lambda a: a.astype(jnp.bfloat16).astype(jnp.float32)
    w1q, w2q, w3q = q(w1), q(w2), q(w3)
    hp = jax.lax.Precision.HIGHEST
    x = x0.astype(jnp.float32)
    n, d = x.shape
    col = jnp.arange(d)[None, :]
    tl = jnp.zeros((n, 1), jnp.float32)
    ok_lo = True
    ok_hi = True
    for i in range(num_steps):
        h1 = q(jnp.maximum(jnp.dot(x, w1q, precision=hp) + b1, 0.0))
        h2 = q(jnp.maximum(jnp.dot(h1, w2q, precision=hp) + b2, 0.0))
        logits = jnp.dot(h2, w3q, precision=hp) + b3
        m = jnp.max(logits, axis=-1, keepdims=True)
        z = logits - m
        e = jnp.exp(z)
        s = jnp.sum(e, axis=-1, keepdims=True)
        cdf = jnp.cumsum(q(e), axis=-1)

        pos = delta[:, i:i + 1].astype(jnp.int32)
        thr = u[:, i:i + 1] * s
        eps = 2e-3 * s
        upper = jnp.take_along_axis(cdf, pos, axis=1)
        lower = jnp.where(pos > 0,
                          jnp.take_along_axis(cdf, jnp.maximum(pos - 1, 0),
                                              axis=1),
                          0.0)
        ok_lo = ok_lo and bool(jnp.all(lower <= thr + eps))
        ok_hi = ok_hi and bool(jnp.all((thr <= upper + eps) | (pos == d - 1)))

        tl = tl + jnp.take_along_axis(z, pos, axis=1) - jnp.log(s)
        x = jnp.abs(x - (col == pos).astype(jnp.float32))
    return x.astype(jnp.int32), tl, ok_lo, ok_hi


if __name__ == "__main__":
    # Small shapes consistent with the module's forward:
    #   num_samples = 8, discrete_dim = 16, embed_dim = 32, num_steps = 4
    num_samples = 8
    discrete_dim = 16
    embed_dim = 32
    num_steps = 4
    hidden = 2 * embed_dim

    key = jax.random.PRNGKey(0)
    k_w1, k_b1, k_w2, k_b2, k_w3, k_b3, k_x, k_u = jax.random.split(key, 8)

    def _linear_init(kw, kb, fan_in, fan_out):
        bound = 1.0 / float(np.sqrt(fan_in))
        w = jax.random.uniform(kw, (fan_in, fan_out), jnp.float32,
                               -bound, bound)
        b = jax.random.uniform(kb, (fan_out,), jnp.float32, -bound, bound)
        return w, b

    w1, b1 = _linear_init(k_w1, k_b1, discrete_dim, hidden)
    w2, b2 = _linear_init(k_w2, k_b2, hidden, hidden)
    w3, b3 = _linear_init(k_w3, k_b3, hidden, discrete_dim)

    init_samples = jax.random.randint(k_x, (num_samples, discrete_dim), 0, 2,
                                      dtype=jnp.int32)

    (samples, delta, total_log, very_init), u = mlp_gibbs_sampler(
        num_steps, init_samples, (w1, b1, w2, b2, w3, b3), key=k_u)

    samples = jax.block_until_ready(samples)
    delta = jax.block_until_ready(delta)
    total_log = jax.block_until_ready(total_log)

    # Shape / passthrough checks.
    assert samples.shape == (num_samples, discrete_dim)
    assert delta.shape == (num_samples, num_steps)
    assert total_log.shape == (num_samples, 1)
    assert np.array_equal(np.asarray(very_init), np.asarray(init_samples))
    d_np = np.asarray(delta)
    assert d_np.min() >= 0 and d_np.max() < discrete_dim

    # Verify the sampled trajectory against a pure-JAX reference that follows
    # the kernel's positions (robust to bf16-vs-f32 ties at CDF boundaries).
    ref_x, ref_tl, ok_lo, ok_hi = _trajectory_check(
        init_samples, u, delta,
        (w1, b1.reshape(1, -1), w2, b2.reshape(1, -1), w3, b3.reshape(1, -1)),
        num_steps)
    assert ok_lo, "sampled position below its inverse-CDF bracket"
    assert ok_hi, "sampled position above its inverse-CDF bracket"
    assert np.array_equal(np.asarray(samples), np.asarray(ref_x))
    assert np.allclose(np.asarray(total_log), np.asarray(ref_tl),
                       atol=5e-3, rtol=1e-3)

    print("KERNEL_OK")
</pallas_src>

<mosaic_0001>
module attributes {stable_mosaic.version = 11 : i64} {
  func.func @_mlp_gibbs_kernel(%arg0: i32, %arg1: memref<8x16xi32, #tpu.memory_space<vmem>>, %arg2: memref<8x4xf32, #tpu.memory_space<vmem>>, %arg3: memref<16x16xbf16, #tpu.memory_space<vmem>>, %arg4: memref<16x128xbf16, #tpu.memory_space<vmem>>, %arg5: memref<1x128xf32, #tpu.memory_space<vmem>>, %arg6: memref<128x128xbf16, #tpu.memory_space<vmem>>, %arg7: memref<1x128xf32, #tpu.memory_space<vmem>>, %arg8: memref<128x16xbf16, #tpu.memory_space<vmem>>, %arg9: memref<1x16xf32, #tpu.memory_space<vmem>>, %arg10: memref<8x16xi32, #tpu.memory_space<vmem>>, %arg11: memref<8x4xi32, #tpu.memory_space<vmem>>, %arg12: memref<8x1xf32, #tpu.memory_space<vmem>>) attributes {dimension_semantics = [#tpu.dimension_semantics<parallel>], iteration_bounds = array<i64: 1>, scalar_prefetch = 0 : i64, scratch_operands = 0 : i64, tpu.core_type = #tpu.core_type<tc>, window_params = [{transform_indices = @transform_0, window_bounds = array<i64: 8, 16>}, {transform_indices = @transform_1, window_bounds = array<i64: 8, 4>}, {pipeline_mode = #tpu.pipeline_mode<synchronous>, transform_indices = @transform_2, window_bounds = array<i64: 16, 16>}, {pipeline_mode = #tpu.pipeline_mode<synchronous>, transform_indices = @transform_3, window_bounds = array<i64: 16, 128>}, {pipeline_mode = #tpu.pipeline_mode<synchronous>, transform_indices = @transform_4, window_bounds = array<i64: 1, 128>}, {pipeline_mode = #tpu.pipeline_mode<synchronous>, transform_indices = @transform_5, window_bounds = array<i64: 128, 128>}, {pipeline_mode = #tpu.pipeline_mode<synchronous>, transform_indices = @transform_6, window_bounds = array<i64: 1, 128>}, {pipeline_mode = #tpu.pipeline_mode<synchronous>, transform_indices = @transform_7, window_bounds = array<i64: 128, 16>}, {pipeline_mode = #tpu.pipeline_mode<synchronous>, transform_indices = @transform_8, window_bounds = array<i64: 1, 16>}, {transform_indices = @transform_9, window_bounds = array<i64: 8, 16>}, {transform_indices = @transform_10, window_bounds = array<i64: 8, 4>}, {transform_indices = @transform_11, window_bounds = array<i64: 8, 1>}]} {
    %c0_i32 = arith.constant 0 : i32
    %0 = vector.broadcast %c0_i32 : i32 to vector<8x4xi32>
    %c0 = arith.constant 0 : index
    %c0_0 = arith.constant 0 : index
    %1 = vector.load %arg11[%c0, %c0_0] : memref<8x4xi32, #tpu.memory_space<vmem>>, vector<8x4xi32>
    tpu.vector_store %arg11[%c0, %c0_0], %0 {strides = array<i32>} : memref<8x4xi32, #tpu.memory_space<vmem>>, vector<8x4xi32>,
    %c0_1 = arith.constant 0 : index
    %c0_2 = arith.constant 0 : index
    %2 = vector.load %arg1[%c0_1, %c0_2] : memref<8x16xi32, #tpu.memory_space<vmem>>, vector<8x16xi32>
    %3 = arith.sitofp %2 : vector<8x16xi32> to vector<8x16xf32>
    %cst = arith.constant 0.000000e+00 : f32
    %4 = vector.broadcast %cst : f32 to vector<8x1xf32>
    %c0_i32_3 = arith.constant 0 : i32
    %c4_i32 = arith.constant 4 : i32
    %5 = arith.addi %c0_i32_3, %c4_i32 : i32
    %c1_i32 = arith.constant 1 : i32
    %6:2 = scf.for %arg13 = %c0_i32_3 to %5 step %c1_i32 iter_args(%arg14 = %3, %arg15 = %4) -> (vector<8x16xf32>, vector<8x1xf32>)  : i32 {
      %10 = arith.truncf %arg14 : vector<8x16xf32> to vector<8x16xbf16>
      %c0_9 = arith.constant 0 : index
      %c0_10 = arith.constant 0 : index
      %11 = vector.load %arg4[%c0_9, %c0_10] : memref<16x128xbf16, #tpu.memory_space<vmem>>, vector<16x128xbf16>
      %cst_11 = arith.constant dense<0.000000e+00> : vector<8x128xf32>
      %12 = tpu.matmul %10, %11, %cst_11 {dimension_numbers = #tpu.dot_dimension_numbers<[1], [0], [0], [1], [0, 0, 1, 1], [], []>} : vector<8x16xbf16>, vector<16x128xbf16>, vector<8x128xf32> -> vector<8x128xf32>
      %c0_12 = arith.constant 0 : index
      %c0_13 = arith.constant 0 : index
      %13 = vector.load %arg5[%c0_12, %c0_13] : memref<1x128xf32, #tpu.memory_space<vmem>>, vector<1x128xf32>
      %14 = vector.broadcast %13 : vector<1x128xf32> to vector<8x128xf32>
      %15 = arith.addf %12, %14 : vector<8x128xf32>
      %cst_14 = arith.constant 0.000000e+00 : f32
      %16 = vector.broadcast %cst_14 : f32 to vector<8x128xf32>
      %17 = arith.maximumf %15, %16 : vector<8x128xf32>
      %18 = arith.truncf %17 : vector<8x128xf32> to vector<8x128xbf16>
      %c0_15 = arith.constant 0 : index
      %c0_16 = arith.constant 0 : index
      %19 = vector.load %arg6[%c0_15, %c0_16] : memref<128x128xbf16, #tpu.memory_space<vmem>>, vector<128x128xbf16>
      %cst_17 = arith.constant dense<0.000000e+00> : vector<8x128xf32>
      %20 = tpu.matmul %18, %19, %cst_17 {dimension_numbers = #tpu.dot_dimension_numbers<[1], [0], [0], [1], [0, 0, 1, 1], [], []>} : vector<8x128xbf16>, vector<128x128xbf16>, vector<8x128xf32> -> vector<8x128xf32>
      %c0_18 = arith.constant 0 : index
      %c0_19 = arith.constant 0 : index
      %21 = vector.load %arg7[%c0_18, %c0_19] : memref<1x128xf32, #tpu.memory_space<vmem>>, vector<1x128xf32>
      %22 = vector.broadcast %21 : vector<1x128xf32> to vector<8x128xf32>
      %23 = arith.addf %20, %22 : vector<8x128xf32>
      %cst_20 = arith.constant 0.000000e+00 : f32
      %24 = vector.broadcast %cst_20 : f32 to vector<8x128xf32>
      %25 = arith.maximumf %23, %24 : vector<8x128xf32>
      %26 = arith.truncf %25 : vector<8x128xf32> to vector<8x128xbf16>
      %c0_21 = arith.constant 0 : index
      %c0_22 = arith.constant 0 : index
      %27 = vector.load %arg8[%c0_21, %c0_22] : memref<128x16xbf16, #tpu.memory_space<vmem>>, vector<128x16xbf16>
      %cst_23 = arith.constant dense<0.000000e+00> : vector<8x16xf32>
      %28 = tpu.matmul %26, %27, %cst_23 {dimension_numbers = #tpu.dot_dimension_numbers<[1], [0], [0], [1], [0, 0, 1, 1], [], []>} : vector<8x128xbf16>, vector<128x16xbf16>, vector<8x16xf32> -> vector<8x16xf32>
      %c0_24 = arith.constant 0 : index
      %c0_25 = arith.constant 0 : index
      %29 = vector.load %arg9[%c0_24, %c0_25] : memref<1x16xf32, #tpu.memory_space<vmem>>, vector<1x16xf32>
      %30 = vector.broadcast %29 : vector<1x16xf32> to vector<8x16xf32>
      %31 = arith.addf %28, %30 : vector<8x16xf32>
      %cst_26 = arith.constant dense<0xFF800000> : vector<8xf32>
      %32 = vector.multi_reduction <maximumf>, %31, %cst_26 [1] : vector<8x16xf32> to vector<8xf32>
      %33 = vector.shape_cast %32 : vector<8xf32> to vector<8x1xf32>
      %34 = vector.broadcast %33 : vector<8x1xf32> to vector<8x16xf32>
      %35 = arith.subf %31, %34 : vector<8x16xf32>
      %36 = math.exp %35 : vector<8x16xf32>
      %cst_27 = arith.constant dense<0.000000e+00> : vector<8xf32>
      %37 = vector.multi_reduction <add>, %36, %cst_27 [1] : vector<8x16xf32> to vector<8xf32>
      %38 = vector.shape_cast %37 : vector<8xf32> to vector<8x1xf32>
      %39 = tpu.iota {dimensions = array<i32: 0>} : vector<4x1xi32>
      %40 = vector.broadcast %arg13 : i32 to vector<4x1xi32>
      %41 = arith.cmpi eq, %39, %40 : vector<4x1xi32>
      %42 = arith.extui %41 : vector<4x1xi1> to vector<4x1xi32>
      %43 = arith.sitofp %42 : vector<4x1xi32> to vector<4x1xf32>
      %c0_28 = arith.constant 0 : index
      %c0_29 = arith.constant 0 : index
      %44 = vector.load %arg2[%c0_28, %c0_29] : memref<8x4xf32, #tpu.memory_space<vmem>>, vector<8x4xf32>
      %cst_30 = arith.constant dense<0.000000e+00> : vector<8x1xf32>
      %45 = tpu.matmul %44, %43, %cst_30 {dimension_numbers = #tpu.dot_dimension_numbers<[1], [0], [0], [1], [0, 0, 1, 1], [], []>} : vector<8x4xf32>, vector<4x1xf32>, vector<8x1xf32> -> vector<8x1xf32>
      %46 = arith.truncf %36 : vector<8x16xf32> to vector<8x16xbf16>
      %c0_31 = arith.constant 0 : index
      %c0_32 = arith.constant 0 : index
      %47 = vector.load %arg3[%c0_31, %c0_32] : memref<16x16xbf16, #tpu.memory_space<vmem>>, vector<16x16xbf16>
      %cst_33 = arith.constant dense<0.000000e+00> : vector<8x16xf32>
      %48 = tpu.matmul %46, %47, %cst_33 {dimension_numbers = #tpu.dot_dimension_numbers<[1], [0], [0], [1], [0, 0, 1, 1], [], []>} : vector<8x16xbf16>, vector<16x16xbf16>, vector<8x16xf32> -> vector<8x16xf32>
      %49 = arith.mulf %45, %38 : vector<8x1xf32>
      %50 = vector.broadcast %49 : vector<8x1xf32> to vector<8x16xf32>
      %51 = arith.cmpf olt, %48, %50 : vector<8x16xf32>
      %52 = arith.extui %51 : vector<8x16xi1> to vector<8x16xi32>
      %cst_34 = arith.constant dense<0> : vector<8xi32>
      %53 = vector.multi_reduction <add>, %52, %cst_34 [1] : vector<8x16xi32> to vector<8xi32>
      %54 = vector.shape_cast %53 : vector<8xi32> to vector<8x1xi32>
      %c15_i32 = arith.constant 15 : i32
      %55 = vector.broadcast %c15_i32 : i32 to vector<8x1xi32>
      %56 = arith.minsi %54, %55 : vector<8x1xi32>
      %57 = tpu.iota {dimensions = array<i32: 1>} : vector<8x16xi32>
      %58 = vector.broadcast %56 : vector<8x1xi32> to vector<8x16xi32>
      %59 = arith.cmpi eq, %57, %58 : vector<8x16xi32>
      %cst_35 = arith.constant 0.000000e+00 : f32
      %60 = vector.broadcast %cst_35 : f32 to vector<8x16xf32>
      %61 = arith.select %59, %35, %60 : vector<8x16xi1>, vector<8x16xf32>
      %cst_36 = arith.constant dense<0.000000e+00> : vector<8xf32>
      %62 = vector.multi_reduction <add>, %61, %cst_36 [1] : vector<8x16xf32> to vector<8xf32>
      %63 = vector.shape_cast %62 : vector<8xf32> to vector<8x1xf32>
      %64 = arith.addf %arg15, %63 : vector<8x1xf32>
      %65 = math.log %38 : vector<8x1xf32>
      %66 = arith.subf %64, %65 : vector<8x1xf32>
      %67 = arith.extui %59 : vector<8x16xi1> to vector<8x16xi32>
      %68 = arith.sitofp %67 : vector<8x16xi32> to vector<8x16xf32>
      %69 = arith.subf %arg14, %68 : vector<8x16xf32>
      %70 = math.absf %69 : vector<8x16xf32>
      %71 = tpu.iota {dimensions = array<i32: 1>} : vector<8x4xi32>
      %72 = vector.broadcast %arg13 : i32 to vector<8x4xi32>
      %73 = arith.cmpi eq, %71, %72 : vector<8x4xi32>
      %74 = vector.shape_cast %56 : vector<8x1xi32> to vector<8x1xi32>
      %75 = vector.broadcast %74 : vector<8x1xi32> to vector<8x4xi32>
      %c0_37 = arith.constant 0 : index
      %c0_38 = arith.constant 0 : index
      %76 = vector.load %arg11[%c0_37, %c0_38] : memref<8x4xi32, #tpu.memory_space<vmem>>, vector<8x4xi32>
      %77 = arith.select %73, %75, %76 : vector<8x4xi1>, vector<8x4xi32>
      %c0_39 = arith.constant 0 : index
      %c0_40 = arith.constant 0 : index
      %78 = vector.load %arg11[%c0_39, %c0_40] : memref<8x4xi32, #tpu.memory_space<vmem>>, vector<8x4xi32>
      tpu.vector_store %arg11[%c0_39, %c0_40], %77 {strides = array<i32>} : memref<8x4xi32, #tpu.memory_space<vmem>>, vector<8x4xi32>,
      scf.yield %70, %66 : vector<8x16xf32>, vector<8x1xf32>
    }
    %c4_i32_4 = arith.constant 4 : i32
    %7 = arith.fptosi %6#0 : vector<8x16xf32> to vector<8x16xi32>
    %c0_5 = arith.constant 0 : index
    %c0_6 = arith.constant 0 : index
    %8 = vector.load %arg10[%c0_5, %c0_6] : memref<8x16xi32, #tpu.memory_space<vmem>>, vector<8x16xi32>
    tpu.vector_store %arg10[%c0_5, %c0_6], %7 {strides = array<i32>} : memref<8x16xi32, #tpu.memory_space<vmem>>, vector<8x16xi32>,
    %c0_7 = arith.constant 0 : index
    %c0_8 = arith.constant 0 : index
    %9 = vector.load %arg12[%c0_7, %c0_8] : memref<8x1xf32, #tpu.memory_space<vmem>>, vector<8x1xf32>
    tpu.vector_store %arg12[%c0_7, %c0_8], %6#1 {strides = array<i32>} : memref<8x1xf32, #tpu.memory_space<vmem>>, vector<8x1xf32>,
    return
  }
  func.func @transform_0(%arg0: i32) -> (i32, i32) {
    %c0_i32 = arith.constant 0 : i32
    %c0_i32_0 = arith.constant 0 : i32
    return %arg0, %c0_i32 : i32, i32
  }
  func.func @transform_1(%arg0: i32) -> (i32, i32) {
    %c0_i32 = arith.constant 0 : i32
    %c0_i32_0 = arith.constant 0 : i32
    return %arg0, %c0_i32 : i32, i32
  }
  func.func @transform_2(%arg0: i32) -> (i32, i32) {
    %c0_i32 = arith.constant 0 : i32
    %c0_i32_0 = arith.constant 0 : i32
    %c0_i32_1 = arith.constant 0 : i32
    return %c0_i32, %c0_i32_0 : i32, i32
  }
  func.func @transform_3(%arg0: i32) -> (i32, i32) {
    %c0_i32 = arith.constant 0 : i32
    %c0_i32_0 = arith.constant 0 : i32
    %c0_i32_1 = arith.constant 0 : i32
    return %c0_i32, %c0_i32_0 : i32, i32
  }
  func.func @transform_4(%arg0: i32) -> (i32, i32) {
    %c0_i32 = arith.constant 0 : i32
    %c0_i32_0 = arith.constant 0 : i32
    %c0_i32_1 = arith.constant 0 : i32
    return %c0_i32, %c0_i32_0 : i32, i32
  }
  func.func @transform_5(%arg0: i32) -> (i32, i32) {
    %c0_i32 = arith.constant 0 : i32
    %c0_i32_0 = arith.constant 0 : i32
    %c0_i32_1 = arith.constant 0 : i32
    return %c0_i32, %c0_i32_0 : i32, i32
  }
  func.func @transform_6(%arg0: i32) -> (i32, i32) {
    %c0_i32 = arith.constant 0 : i32
    %c0_i32_0 = arith.constant 0 : i32
    %c0_i32_1 = arith.constant 0 : i32
    return %c0_i32, %c0_i32_0 : i32, i32
  }
  func.func @transform_7(%arg0: i32) -> (i32, i32) {
    %c0_i32 = arith.constant 0 : i32
    %c0_i32_0 = arith.constant 0 : i32
    %c0_i32_1 = arith.constant 0 : i32
    return %c0_i32, %c0_i32_0 : i32, i32
  }
  func.func @transform_8(%arg0: i32) -> (i32, i32) {
    %c0_i32 = arith.constant 0 : i32
    %c0_i32_0 = arith.constant 0 : i32
    %c0_i32_1 = arith.constant 0 : i32
    return %c0_i32, %c0_i32_0 : i32, i32
  }
  func.func @transform_9(%arg0: i32) -> (i32, i32) {
    %c0_i32 = arith.constant 0 : i32
    %c0_i32_0 = arith.constant 0 : i32
    return %arg0, %c0_i32 : i32, i32
  }
  func.func @transform_10(%arg0: i32) -> (i32, i32) {
    %c0_i32 = arith.constant 0 : i32
    %c0_i32_0 = arith.constant 0 : i32
    return %arg0, %c0_i32 : i32, i32
  }
  func.func @transform_11(%arg0: i32) -> (i32, i32) {
    %c0_i32 = arith.constant 0 : i32
    %c0_i32_0 = arith.constant 0 : i32
    return %arg0, %c0_i32 : i32, i32
  }
}

</mosaic_0001>

<bundles_post_ra>
// kernel: tpu_custom_call.1
= control target key start
LH: loop header
LB: loop body
LE: loop exit
PB: predicated region body
PF: predicated region fallthrough
CT: control target
= control target key end

     0   :  { %17 = vsyncpa [#allocation3], 0  ;;  %vm37_vm0 = vcmask 31744   ;;  %v771_v1 = vmov 0   ;;  %v843_v3 = vmov 0.0   ;;  %s847_s21 = smov 0   ;;  %s997_s0 = inlined_call_operand.vmem [shape: s32[8,16], index: 0, kind: input, shape index: {}]   ;;  %s998_s1 = inlined_call_operand.vmem [shape: f32[8,4], index: 1, kind: input, shape index: {}]   ;;  %s999_s2 = inlined_call_operand.vmem [shape: bf16[16,16], index: 2, kind: input, shape index: {}]   ;;  %s1000_s3 = inlined_call_operand.vmem [shape: bf16[16,128], index: 3, kind: input, shape index: {}]   ;;  %s1001_s4 = inlined_call_operand.vmem [shape: f32[1,128], index: 4, kind: input, shape index: {}]   ;;  %s1002_s5 = inlined_call_operand.vmem [shape: bf16[128,128], index: 5, kind: input, shape index: {}]   ;;  %s1003_s6 = inlined_call_operand.vmem [shape: f32[1,128], index: 6, kind: input, shape index: {}]   ;;  %s1004_s7 = inlined_call_operand.vmem [shape: bf16[128,16], index: 7, kind: input, shape index: {}]   ;;  %s1005_s8 = inlined_call_operand.vmem [shape: f32[1,16], index: 8, kind: input, shape index: {}]   ;;  %s1006_s9 = inlined_call_operand.hbm [shape: s32[8,16], index: 9, kind: output, shape index: {0}]   ;;  %s1007_s10 = inlined_call_operand.vmem [shape: s32[8,4], index: 10, kind: output, shape index: {1}]   ;;  %s1008_s11 = inlined_call_operand.vmem [shape: f32[8,1], index: 11, kind: output, shape index: {2}]  }
   0x1   :  { %v39_v0 = vld [vmem:[%s997_s0] sm:$0xff]  ;;  %38 = vst.msk [vmem:[%s1007_s10] sm:$0xff] %vm37_vm0, %v771_v1 }
   0x2   :  { %v40_v2 = vcvt.s32.f32 %v39_v0  }
   0x3 LB: > { %v701_v4 = vld [vmem:[%s1000_s3] sm:$0xff]   ;;  %v772_v5 = vmov 0.0   ;;  %vm773_vm1 = vmmov 0   ;;  %v49_v6 = vpack.c.bf16 %v765_v2, %v765_v2  ;;  %vm65_vm2 = vcmask 130048   ;;  %v703_v8 = vld [vmem:[%s1002_s5 + $0x8] sm:$0xff]   ;;  %v704_v9 = vld [vmem:[%s1002_s5 + $0x10] sm:$0xff]   ;;  %s769_s21 = sphi %s847_s21, %s46_s21   ;;  %v765_v2 = vphi %v40_v2, %v1010_v2   ;;  %v761_v3 = vphi %v843_v3, %v1009_v3  }
   0x4   : > { %611 = vmatprep.subr.bf16.mxu1 %v772_v5  ;;  %637 = vmatprep.subr.bf16.mxu0 %v772_v5  ;;  %v702_v7 = vld [vmem:[%s1002_s5] sm:$0xff]   ;;  %v705_v10 = vld [vmem:[%s1002_s5 + $0x18] sm:$0xff]   ;;  %v707_v12 = vld [vmem:[%s1002_s5 + $0x28] sm:$0xff]   ;;  %v344_v39 = vlaneseq  ;;  %v346_v41 = vstv %s769_s21  ;;  %vm354_vm3 = vcmask 1043456   ;;  %v774_v60 = vmov 0   ;;  %s46_s21 = sadd.s32 1, %s769_s21  }
   0x5   : > { %612 = vmatpush3.bf16.msra.mxu1 %v701_v4  ;;  %613 = vmatprep.mubr.msk.bf16.mxu1 %vm773_vm1, %v772_v5  ;;  %v706_v11 = vld [vmem:[%s1002_s5 + $0x20] sm:$0xff]   ;;  %v708_v13 = vld [vmem:[%s1002_s5 + $0x30] sm:$0xff]   ;;  %v709_v14 = vld [vmem:[%s1002_s5 + $0x38] sm:$0xff]   ;;  %p43_p0 = scmp.ge.s32.totalorder %s46_s21, 4  }
   0x6   : > { %617 = vmatprep.subr.bf16.mxu1 %v772_v5  ;;  %653 = vmatprep.mubr.msk.bf16.mxu0 %vm773_vm1, %v772_v5  ;;  %v710_v15 = vld [vmem:[%s1004_s7] sm:$0xff]   ;;  %v711_v16 = vld [vmem:[%s1004_s7 + $0x8] sm:$0xff]   ;;  %v712_v17 = vld [vmem:[%s1004_s7 + $0x10] sm:$0xff]   ;;  %v345_v40 = vshrl.u32 %v344_v39, 7  ;;  %vm525_vm9 = vcmask (%p43_p0), 7168   ;;  %s775_s14 = smov (%p43_p0), [#allocation2]  }
   0x7   : > { %638 = vmatpush3.bf16.msra.mxu0 %v710_v15  ;;  %v713_v18 = vld [vmem:[%s1004_s7 + $0x18] sm:$0xff]   ;;  %v714_v19 = vld [vmem:[%s1004_s7 + $0x20] sm:$0xff]   ;;  %v715_v20 = vld [vmem:[%s1004_s7 + $0x28] sm:$0xff]   ;;  %699 = vset.pattern.permute.xlu1 %v774_v60  ;;  %s533_s15 = sshll.u32 (%p43_p0), %s775_s14, 4  ;;  %s534_s15 = int_to_ptr.vmem [resolvable:$true] %s533_s15 }
   0x8   : > { %614 = vmatmul.mubr.msk.bf16.vlgmr.msra.gmra.mrb[0].mxu1 %vm65_vm2, %v49_v6  ;;  %639 = vmatprep.subr.bf16.mxu0 %v772_v5  ;;  %v560_v21 = vld [vmem:[%s1001_s4] ss:$0 sm:$0xff]  ;;  %v716_v29 = vld [vmem:[%s1004_s7 + $0x30] sm:$0xff]   ;;  %v717_v30 = vld [vmem:[%s1004_s7 + $0x38] sm:$0xff]   ;;  %vm347_vm4 = vcmp.eq.s32.totalorder %v345_v40, %v346_v41  ;;  %s723_s16 = scalar_lea.vmem (%p43_p0), %s534_s15, 128  ;;  %p728_p2 = scmp.lt.s32.totalorder (%p43_p0), %s534_s15, %s534_s15 }
   0x9   : > { %618 = vmatpush3.bf16.msra.mxu1 %v702_v7  ;;  %633 = vmatprep.mubr.msk.bf16.mxu1 %vm773_vm1, %v772_v5  ;;  %v563_v31 = vld [vmem:[%s1003_s6] ss:$0 sm:$0xff]  ;;  %v581_v43 = vsel %vm347_vm4, 1.0, %v772_v5  ;;  %p724_p1 = scmp.ne.s32.totalorder (%p43_p0), %s534_s15, %s723_s16  ;;  %p729_p3 = scmp.lt.s32.totalorder (%p43_p0), %s723_s16, %s723_s16 }
   0xa   : > { %619 = vmatprep.subr.bf16.mxu1 %v772_v5  ;;  %v350_v42 = vld [vmem:[%s998_s1] sm:$0xff]  ;;  %700 = vset.pattern.permute.xlu0 %v774_v60 }
   0xb   : > { %640 = vmatpush3.bf16.msra.mxu0 %v711_v16  ;;  %v572_v44 = vld [vmem:[%s1005_s8] ss:$0 sm:$0xff]  ;;  %v504_v16 = vand.u32 127, %v344_v39  ;;  %p730_p4 = por (%p43_p0), %p729_p3, %p728_p2 }
   0xc   : > { %641 = vmatprep.subr.bf16.mxu0 %v772_v5  ;;  %v718_v51 = vld [vmem:[%s999_s2] sm:$0xff]  }
   0xd   : > { %620 = vmatpush3.bf16.msra.mxu1 %v703_v8  ;;  %vm518_vm6 = vcmp.eq.s32.totalorder %v504_v16, %v346_v41  ;;  %p731_p5 = pnand (%p43_p0), %p730_p4, %p724_p1 }
   0xe   : > { %621 = vmatprep.subr.bf16.mxu1 %v772_v5 }
   0xf   : > { %642 = vmatpush3.bf16.msra.mxu0 %v712_v17 }
  0x10   : > { %643 = vmatprep.subr.bf16.mxu0 %v772_v5 }
  0x11   : > { %622 = vmatpush3.bf16.msra.mxu1 %v704_v9 }
  0x12   : > { %623 = vmatprep.subr.bf16.mxu1 %v772_v5 }
  0x13   : > { %644 = vmatpush3.bf16.msra.mxu0 %v713_v18 }
  0x14   : > { %645 = vmatprep.subr.bf16.mxu0 %v772_v5 }
  0x15   : > { %624 = vmatpush3.bf16.msra.mxu1 %v705_v10 }
  0x16   : > { %625 = vmatprep.subr.bf16.mxu1 %v772_v5 }
  0x17   : > { %646 = vmatpush3.bf16.msra.mxu0 %v714_v19 }
  0x18   : > { %647 = vmatprep.subr.bf16.mxu0 %v772_v5 }
  0x19   : > { %626 = vmatpush3.bf16.msra.mxu1 %v706_v11 }
  0x1a   : > { %627 = vmatprep.subr.bf16.mxu1 %v772_v5 }
  0x1b   : > { %648 = vmatpush3.bf16.msra.mxu0 %v715_v20  ;;  %v519_v20 = vld [vmem:[%s1007_s10] sm:$0xff] }
  0x1c   : > { %649 = vmatprep.subr.bf16.mxu0 %v772_v5 }
  0x1d   : > { %628 = vmatpush3.bf16.msra.mxu1 %v707_v12 }
  0x1e   : > { %629 = vmatprep.subr.bf16.mxu1 %v772_v5 }
  0x1f   : > { %650 = vmatpush3.bf16.msra.mxu0 %v716_v29 }
  0x20   : > { %651 = vmatprep.subr.bf16.mxu0 %v772_v5 }
  0x21   : > { %630 = vmatpush3.bf16.msra.mxu1 %v708_v13 }
  0x22   : > { %631 = vmatprep.subr.bf16.mxu1 %v772_v5 }
  0x23   : > { %652 = vmatpush3.bf16.msra.mxu0 %v717_v30 }
  0x24   : > { %662 = vmatprep.subr.bf16.mxu0 %v772_v5 }
  0x25   : > { %632 = vmatpush3.bf16.msra.mxu1 %v709_v14 }
  0x26   : > { %657 = vmatprep.subr.mxu1 %v772_v5 }
  0xdb   : > { %v103_v22 = vpop.f32.mrb[0].mxu1 }
  0xdc   : > { %v104_v23 = vadd.f32 %v560_v21, %v103_v22  ;;  %v615_v24 = vpop.f32.mrb[1].mxu1 }
  0xdd   : > { %v106_v25 = vpop.f32.mrb[2].mxu1 }
  0xde   : > { %v109_v26 = vmax.f32 %v104_v23, 0.0  ;;  %v616_v27 = vpop.f32.mrb[3].mxu1 }
  0xe0   : > { %v110_v28 = vpack.c.bf16 %v109_v26, %v109_v26 }
  0xe2   : > { %634 = vmatmul.mubr.bf16.vlgmr.msra.gmra.mrb[4].mxu1 %v110_v28 }
  0xe3   : > { %659 = vmatprep.mubr.msk.f32.mxu1 %vm773_vm1, %v772_v5  ;;  %658 = vmatpush3.msk.msra.mxu1 %vm354_vm3, %v581_v43 }
  0xea   : > { %660 = vmatmul.mubr.msk.f32.vlgmr.msra.gmra.mrb[8].mxu1 %vm37_vm0, %v350_v42 }
 0x1b5   : > { %v216_v32 = vpop.f32.mrb[4].mxu1 }
 0x1b6   : > { %v217_v33 = vadd.f32 %v563_v31, %v216_v32  ;;  %v635_v34 = vpop.f32.mrb[5].mxu1 }
 0x1b7   : > { %v219_v35 = vpop.f32.mrb[6].mxu1 }
 0x1b8   : > { %v222_v36 = vmax.f32 %v217_v33, 0.0  ;;  %v636_v37 = vpop.f32.mrb[7].mxu1 }
 0x1ba   : > { %v223_v38 = vpack.c.bf16 %v222_v36, %v222_v36 }
 0x1bc   : > { %654 = vmatmul.mubr.bf16.vlgmr.msra.gmra.mrb[0].mxu0 %v223_v38 }
 0x1bd   : > { %664 = vmatprep.mubr.msk.bf16.mxu0 %vm773_vm1, %v772_v5  ;;  %663 = vmatpush3.bf16.msra.mxu0 %v718_v51  ;;  %v424_v52 = vpop.f32.mrb[8].mxu1 }
 0x1be   : > { %v661_v53 = vpop.f32.mrb[9].mxu1 }
 0x28f   : > { %v329_v45 = vpop.f32.mrb[0].mxu0 }
 0x290   : > { %v330_v46 = vadd.f32 %v572_v44, %v329_v45  ;;  %v655_v47 = vpop.f32.mrb[1].mxu0 }
 0x291   : > { %v332_v48 = vpop.f32.mrb[2].mxu0 }
 0x292   : > { %v656_v49 = vpop.f32.mrb[3].mxu0  ;;  %v335_v50 = vsel %vm65_vm2, %v330_v46, -inf }
 0x293   : > { %336 = vmax.xlane.f32.xlu0 %v335_v50 }
 0x320   : > { %v337_v54 = vpop.xlane.xlu0 %336 }
 0x321   : > { %v338_v55 = vsub.f32 %v330_v46, %v337_v54 }
 0x323   : > { %v339_v56 = vmul.f32 1.442695, %v338_v55 }
 0x325   : > { %719 = vpow2.f32 %v339_v56 }
 0x32f   : > { %v720_v57 = vpop.eup %719 }
 0x330   : > { %v341_v58 = vsel %vm65_vm2, %v720_v57, 0.0  ;;  %v428_v59 = vpack.c.bf16 %v720_v57, %v720_v57 }
 0x331   : > { %342 = vadd.xlane.f32.xlu0 %v341_v58 }
 0x332   : > { %665 = vmatmul.mubr.msk.bf16.vlgmr.msra.gmra.mrb[4].mxu0 %vm65_vm2, %v428_v59 }
 0x3be   : > { %v343_v61 = vpop.xlane.xlu0 %342 }
 0x3bf   : > { %v480_v62 = vmul.f32 %v424_v52, %v343_v61  ;;  %721 = vlog2.f32 %v343_v61 }
 0x3c1   : > { %483 = vperm.xlu1 %699, %v480_v62  }
 0x3c9   : > { %v722_v28 = vpop.eup %721 }
 0x3ca   : > { %v512_v30 = vmul.f32 0.6931472, %v722_v28 }
 0x405   : > { %v474_v63 = vpop.f32.mrb[4].mxu0 }
 0x406   : > { %v666_v0 = vpop.f32.mrb[5].mxu0 }
 0x407   : > { %v477_v1 = vpop.f32.mrb[6].mxu0 }
 0x408   : > { %v667_v4 = vpop.f32.mrb[7].mxu0 }
 0x440   : > { %v484_v6 = vpop.permute.xlu1 %483 }
 0x441   : > { %vm486_vm5 = vcmp.lt.f32.partialorder %v474_v63, %v484_v6 }
 0x442   : > { %v487_v7 = vsel %vm486_vm5, 1, %v774_v60 }
 0x443   : > { %v488_v8 = vsel %vm65_vm2, %v487_v7, 0 }
 0x444   : > { %v490_v9 = vshrl.u32 %v488_v8, 16  ;;  %v489_v10 = vand.u32 65535, %v488_v8 }
 0x446   : > { %v492_v11 = vcvt.s32.f32 %v490_v9  ;;  %v491_v12 = vcvt.s32.f32 %v489_v10 }
 0x448   : > { %495 = vadd.xlane.f32.xlu1 %v492_v11  ;;  %493 = vadd.xlane.f32.xlu0 %v491_v12 }
 0x4d5   : > { %v496_v13 = vpop.xlane.xlu1 %495  ;;  %v494_v14 = vpop.xlane.xlu0 %493 }
 0x4d6   : > { %v498_v15 = vcvt.f32.s32 %v496_v13  ;;  %v497_v18 = vcvt.f32.s32 %v494_v14 }
 0x4d8   : > { %v499_v17 = vshll.u32 %v498_v15, 16 }
 0x4da   : > { %v500_v19 = vadd.s32 %v499_v17, %v497_v18 }
 0x4dc   : > { %vm501_vm7 = vcmp.lt.s32.totalorder %v500_v19, 15 }
 0x4dd   : > { %v502_v21 = vsel %vm501_vm7, %v500_v19, 15 }
 0x4de   : > { %vm505_vm8 = vcmp.eq.s32.totalorder %v504_v16, %v502_v21  ;;  %v520_v22 = vsel %vm518_vm6, %v502_v21, %v519_v20 }
 0x4df   : > { %v506_v23 = vsel %vm505_vm8, %v338_v55, 0.0  ;;  %v586_v24 = vsel %vm505_vm8, 1.0, %v772_v5  ;;  %521 = vst.msk [vmem:[%s1007_s10] sm:$0xff] %vm37_vm0, %v520_v22 }
 0x4e0   : > { %v507_v25 = vsel %vm65_vm2, %v506_v23, 0.0  ;;  %v516_v26 = vsub.f32 %v765_v2, %v586_v24 }
 0x4e1   : > { %508 = vadd.xlane.f32.xlu0 %v507_v25 }
 0x4e2   : > { %v517_v27 = vand.u32 2147483647, %v516_v26  }
 0x4e4   : > { %v1010_v2 = vmov %v517_v27 }
 0x4e5   :  { %v668_v2 = vtrunc.f32 (%p43_p0), %v517_v27 }
 0x4e7   :  { %v669_v5 = vcvt.f32.s32 (%p43_p0), %v668_v2 }
 0x4e9   :  { %524 = vst.msk [vmem:[#allocation2] sm:$0xff] (%p43_p0), %vm65_vm2, %v669_v5 }
 0x56d   :  { %45 = sbr.rel (!%p43_p0) target bundleno = 3 (0x3), region = 79 }
 0x56e   : > { %v509_v29 = vpop.xlane.xlu0 %508 }
 0x56f   : > { %v510_v31 = vadd.f32 %v761_v3, %v509_v29 }
 0x571   : > { %v513_v32 = vsub.f32 %v510_v31, %v512_v30  }
 0x573   : > { %v1009_v3 = vmov %v513_v32  ;;  %526 = vst.msk [vmem:[%s1008_s11] sm:$0xff] (%p43_p0), %vm525_vm9, %v513_v32 }
 0x574   :  { %734 = shalt.err (!%p731_p5)
}
 0x575   :  { %s735_s2 = scalar_lea.hbm %s1006_s9, 128 }
 0x576   :  { %p736_p6 = scmp.ne.s32.totalorder %s1006_s9, %s735_s2  ;;  %p739_p7 = scmp.lt.u32.totalorder %s735_s2, %s1006_s9 }
 0x578   :  { %p741_p8 = pnand %p739_p7, %p736_p6 }
 0x57a   :  { %744 = shalt.err (!%p741_p8)
}
 0x57b   :  { %536 = dma.vmem_to_hbm [thread:$0]  %s534_s15, 128, %s1006_s9, [#allocation3]  }
 0x57c   :  { %757 = dma.done.wait [#allocation3], 128  }
 0x57d   :  { %758 = vsyncadd [#allocation3], 4294967168 }
 0x57e   :  { %548 = vsyncpa [#allocation3], 1 }

</bundles_post_ra>
